<compile_context>
chip_gen: v7x
topology: tpu7x:2x2x1
jax: 0.10.0
libtpu: 0.0.40
codegen_flags: <defaults>
</compile_context>

<pallas_src>
import math

import jax
import jax.numpy as jnp
import numpy as np
from jax.experimental import pallas as pl
from jax.experimental.pallas import tpu as pltpu

_LANE = 128
_MIN_TILE_ROWS = 16                      # sublane granularity incl. 16-bit dtypes
_PIX_CHUNK = _MIN_TILE_ROWS * _LANE      # 2048 pixels -> r_pad % 16 == 0

_KERNEL_IN_DTYPES = (jnp.float32, jnp.bfloat16, jnp.int32, jnp.int16)


# ----------------------------------------------------------------------------
# Parameter setup (mirrors RigidPlanar.__init__ exactly, plain numpy glue)
# ----------------------------------------------------------------------------
def make_rigid_planar_params(
    detector_shape,
    pixel_shape,
    sample_y_tilt_degrees=70.0,
    sample_x_tilt_degrees=0.0,
    detector_tilt_degrees=0.0,
    binning_amounts=(1, 1),
    pattern_center_guess=(0.5, 0.5, 0.5),
):
    # pixel_shape / binning_amounts are validated but unused in the transform,
    # exactly as in the PyTorch module.
    del pixel_shape, binning_amounts
    n_rows, n_cols = detector_shape

    ingest_matrix = np.eye(4, dtype=np.float32)
    ingest_matrix[0, 0] = -1.0
    ingest_matrix[0, 3] = n_rows - 1

    pcx_bruker, pcy_bruker, pcz_bruker = pattern_center_guess
    pcx_delta = n_cols * (0.5 - pcx_bruker)
    pcy_delta = n_rows * (0.5 - pcy_bruker)
    pcz_delta = n_rows * pcz_bruker

    matrix_to_det = np.zeros((4, 4), dtype=np.float32)
    matrix_to_det[0, 0] = -1.0
    matrix_to_det[1, 1] = 1.0
    matrix_to_det[0, 3] = (n_rows - 1) * 0.5 + pcy_delta
    matrix_to_det[1, 3] = (1 - n_cols) * 0.5 + pcx_delta
    matrix_to_det[2, 3] = pcz_delta
    matrix_to_det[2, 2] = 1.0
    matrix_to_det[3, 3] = 1.0

    azimuthal_rad = math.radians(sample_x_tilt_degrees)
    cos_omega, sin_omega = math.cos(azimuthal_rad), math.sin(azimuthal_rad)
    omega_rotation = np.eye(4, dtype=np.float32)
    omega_rotation[1, 1] = cos_omega
    omega_rotation[1, 2] = sin_omega
    omega_rotation[2, 1] = -sin_omega
    omega_rotation[2, 2] = cos_omega

    alpha_rad = math.radians(detector_tilt_degrees - sample_y_tilt_degrees + 90.0)
    cos_alpha, sin_alpha = math.cos(alpha_rad), math.sin(alpha_rad)
    alpha_rotation = np.eye(4, dtype=np.float32)
    alpha_rotation[0, 0] = cos_alpha
    alpha_rotation[0, 2] = sin_alpha
    alpha_rotation[2, 0] = -sin_alpha
    alpha_rotation[2, 2] = cos_alpha

    transformation = alpha_rotation @ omega_rotation @ matrix_to_det @ ingest_matrix
    rotation_matrix = jnp.asarray(transformation[:3, :3], dtype=jnp.float32)
    translation_vector = jnp.asarray(transformation[:3, 3], dtype=jnp.float32)
    return rotation_matrix, translation_vector


# ----------------------------------------------------------------------------
# Pallas kernel
#   coords_ref : (2, TR, 128)  x / y planes (f32 / bf16 / i32 / i16), lane-dense
#   out_ref    : (3, TR, 128)  sample x / y / z planes (f32 or opt-in bf16)
#   rot_ref    : (9,)  SMEM, row-major 3x3
#   trans_ref  : (3,)  SMEM
# The z input column is identically zero, so only the first two columns of the
# rotation matrix are used.  Purely VPU mul-adds; DMA-bound by design.
# ----------------------------------------------------------------------------
def rigid_planar_kernel(rot_ref, trans_ref, coords_ref, out_ref):
    x = coords_ref[0].astype(jnp.float32)          # (TR, 128)
    y = coords_ref[1].astype(jnp.float32)          # (TR, 128)

    r00 = rot_ref[0]
    r01 = rot_ref[1]
    r10 = rot_ref[3]
    r11 = rot_ref[4]
    r20 = rot_ref[6]
    r21 = rot_ref[7]
    t0 = trans_ref[0]
    t1 = trans_ref[1]
    t2 = trans_ref[2]

    od = out_ref.dtype
    out_ref[0] = (x * r00 + y * r01 + t0).astype(od)
    out_ref[1] = (x * r10 + y * r11 + t1).astype(od)
    out_ref[2] = (x * r20 + y * r21 + t2).astype(od)


# ----------------------------------------------------------------------------
# Tiling helpers
# ----------------------------------------------------------------------------
def _round_up(v, m):
    return ((v + m - 1) // m) * m


def _default_tile_rows():
    """Per-generation default tile (rows of 128 pixels)."""
    try:
        kind = jax.devices()[0].device_kind.lower()
    except Exception:
        kind = ""
    if "v7" in kind:
        # v7x: ~3.2 TB/s HBM makes the ~600-cycle per-step overhead relatively
        # larger; 2048 rows ~= 10 MiB double-buffered, well under the 32 MiB
        # default scoped VMEM limit.
        return 2048
    # v5e / v6e: 1024 rows ~= 5 MiB double-buffered (fits v5e's 16 MiB default
    # scoped VMEM) and is already ~85-90% of the HBM roofline.
    return 1024


def _pick_tile_rows(r_pad, tile_rows):
    tile_rows = max(_MIN_TILE_ROWS, _round_up(int(tile_rows), _MIN_TILE_ROWS))
    tr = min(tile_rows, r_pad)
    # Keep >= 2 grid steps whenever possible so dimension_semantics=("parallel",)
    # can shard the grid across both TensorCores on v7x; a single-step grid
    # would idle one core.
    if r_pad >= 2 * _MIN_TILE_ROWS and pl.cdiv(r_pad, tr) < 2:
        tr = _round_up((r_pad + 1) // 2, _MIN_TILE_ROWS)
    return tr


def _canonical_in_dtype(x):
    for d in _KERNEL_IN_DTYPES:
        if x.dtype == jnp.dtype(d):
            return x
    # NOTE: silent downcast (e.g. f64 under x64) -> f32, consistent with the
    # fp32 PyTorch module.
    return x.astype(jnp.float32)


# ----------------------------------------------------------------------------
# Pallas call on the planar (2, r_pad, 128) layout
# ----------------------------------------------------------------------------
def _pallas_planar_call(coords3, rotation_matrix, translation_vector, tr, out_dtype):
    r_pad = coords3.shape[1]
    n_pad = r_pad * _LANE
    in_bytes = jnp.dtype(coords3.dtype).itemsize
    out_bytes = jnp.dtype(out_dtype).itemsize

    rot_flat = rotation_matrix.astype(jnp.float32).reshape(9)
    trans_flat = translation_vector.astype(jnp.float32).reshape(3)

    return pl.pallas_call(
        rigid_planar_kernel,
        out_shape=jax.ShapeDtypeStruct((3, r_pad, _LANE), out_dtype),
        grid=(pl.cdiv(r_pad, tr),),
        in_specs=[
            pl.BlockSpec(memory_space=pltpu.MemorySpace.SMEM),     # rotation (9,)
            pl.BlockSpec(memory_space=pltpu.MemorySpace.SMEM),     # translation (3,)
            pl.BlockSpec((2, tr, _LANE), lambda i: (0, i, 0)),     # pixel coords
        ],
        out_specs=pl.BlockSpec((3, tr, _LANE), lambda i: (0, i, 0)),
        compiler_params=pltpu.CompilerParams(
            dimension_semantics=("parallel",)),
        cost_estimate=pl.CostEstimate(
            flops=12 * n_pad,                                      # 6 mul + 6 add / px
            transcendentals=0,
            bytes_accessed=(2 * in_bytes + 3 * out_bytes) * n_pad  # bandwidth-bound
        ),
    )(rot_flat, trans_flat, coords3)


# ----------------------------------------------------------------------------
# Planar fast path: (2, N) -> (3, N), no transposes around the kernel.
# ----------------------------------------------------------------------------
def rigid_planar_forward_planar(coords_planar, rotation_matrix, translation_vector,
                                *, tile_rows=None, out_dtype=jnp.float32):
    if coords_planar.ndim != 2 or coords_planar.shape[0] != 2:
        raise ValueError("coords_planar must have shape (2, n_pixels)")
    n = coords_planar.shape[1]
    coords = _canonical_in_dtype(coords_planar)

    n_pad = _round_up(max(n, 1), _PIX_CHUNK)
    if n_pad != n:
        coords = jnp.pad(coords, ((0, 0), (0, n_pad - n)))
    r_pad = n_pad // _LANE

    tr = _pick_tile_rows(r_pad, _default_tile_rows() if tile_rows is None else tile_rows)

    # Minor-dim split of a row-major array: no transpose, layout-friendly.
    coords3 = coords.reshape(2, r_pad, _LANE)
    out = _pallas_planar_call(coords3, rotation_matrix, translation_vector, tr, out_dtype)
    out = out.reshape(3, n_pad)
    if n_pad != n:
        out = out[:, :n]
    return out


# ----------------------------------------------------------------------------
# Pure-JAX reference (mirrors the PyTorch forward) and the PyTorch-compatible
# (n_pixels, 2) -> (n_pixels, 3) wrapper.
# ----------------------------------------------------------------------------
def rigid_planar_forward_ref(pixel_coordinates, rotation_matrix, translation_vector):
    pc = pixel_coordinates.astype(jnp.float32)
    coords3 = jnp.concatenate([pc, jnp.zeros_like(pc[:, 0:1])], axis=-1)
    return (rotation_matrix @ coords3.T + translation_vector[:, None]).T


def rigid_planar_forward(pixel_coordinates, rotation_matrix, translation_vector,
                         *, tile_rows=None, out_dtype=jnp.float32,
                         min_pallas_pixels=65536):
    """RigidPlanar.forward drop-in: (n_pixels, 2) -> (n_pixels, 3).

    Prefer `rigid_planar_forward_planar` for large detectors: this interface
    pays one transpose copy on each side purely for layout compatibility, so
    the Pallas dispatch threshold is kept high.
    """
    n = pixel_coordinates.shape[0]
    if n < min_pallas_pixels:
        return rigid_planar_forward_ref(
            pixel_coordinates, rotation_matrix, translation_vector).astype(out_dtype)
    # TODO(synk): fold the (N,2)/(N,3) row-major de/interleave into the kernel's
    # idle XLU instead of these transposes; 3 does not divide the 128-lane vreg,
    # so packing the interleaved output needs a lane gather, not a simple roll.
    out_planar = rigid_planar_forward_planar(
        pixel_coordinates.T, rotation_matrix, translation_vector,
        tile_rows=tile_rows, out_dtype=out_dtype)
    return out_planar.T


if __name__ == "__main__":
    rotation_matrix, translation_vector = make_rigid_planar_params(
        detector_shape=(16, 16),
        pixel_shape=(1.0, 1.0),
        sample_y_tilt_degrees=70.0,
        sample_x_tilt_degrees=0.0,
        detector_tilt_degrees=0.0,
        binning_amounts=(1, 1),
        pattern_center_guess=(0.5, 0.5, 0.5),
    )

    key = jax.random.PRNGKey(0)
    k_a, k_b, k_d = jax.random.split(key, 3)

    # A) Planar fast path (no wrapper transposes), tiny non-multiple-of-2048
    #    pixel count -> exercises pad + clamped single-step grid.
    n_a = 200
    pix_a = jax.random.uniform(k_a, (n_a, 2), dtype=jnp.float32,
                               minval=0.0, maxval=15.0)
    out_a = jax.block_until_ready(
        rigid_planar_forward_planar(pix_a.T, rotation_matrix, translation_vector))
    ref_a = rigid_planar_forward_ref(pix_a, rotation_matrix, translation_vector)
    assert out_a.shape == (3, n_a)
    np.testing.assert_allclose(np.asarray(out_a.T), np.asarray(ref_a),
                               rtol=1e-5, atol=1e-5)

    # B) Drop-in (N,2)->(N,3) interface forced onto the Pallas path; exercises
    #    the grid-length guard (>= 2 grid steps) and padded tail columns.
    n_b = 40000
    pix_b = jax.random.uniform(k_b, (n_b, 2), dtype=jnp.float32,
                               minval=0.0, maxval=255.0)
    out_b = jax.block_until_ready(
        rigid_planar_forward(pix_b, rotation_matrix, translation_vector,
                             min_pallas_pixels=1024))
    ref_b = rigid_planar_forward_ref(pix_b, rotation_matrix, translation_vector)
    assert out_b.shape == (n_b, 3)
    np.testing.assert_allclose(np.asarray(out_b), np.asarray(ref_b),
                               rtol=1e-5, atol=1e-4)

    # C) Opt-in bf16 output (halves output HBM traffic); loose tolerance since
    #    the final store is rounded to bf16.
    out_c = jax.block_until_ready(
        rigid_planar_forward_planar(pix_a.T, rotation_matrix, translation_vector,
                                    out_dtype=jnp.bfloat16))
    assert out_c.dtype == jnp.bfloat16
    np.testing.assert_allclose(np.asarray(out_c.astype(jnp.float32).T),
                               np.asarray(ref_a), rtol=1e-2, atol=1e-1)

    # D) Tiny detector through the dispatcher -> fused pure-XLA path.
    n_d = 64
    pix_d = jax.random.uniform(k_d, (n_d, 2), dtype=jnp.float32,
                               minval=0.0, maxval=15.0)
    out_d = jax.block_until_ready(
        rigid_planar_forward(pix_d, rotation_matrix, translation_vector))
    np.testing.assert_allclose(
        np.asarray(out_d),
        np.asarray(rigid_planar_forward_ref(pix_d, rotation_matrix, translation_vector)),
        rtol=1e-5, atol=1e-5)

    print("KERNEL_OK")
</pallas_src>

<mosaic_0001>
module attributes {stable_mosaic.version = 11 : i64} {
  func.func @rigid_planar_kernel(%arg0: i32, %arg1: memref<9xf32, #tpu.memory_space<smem>>, %arg2: memref<3xf32, #tpu.memory_space<smem>>, %arg3: memref<2x16x128xf32, #tpu.memory_space<vmem>>, %arg4: memref<3x16x128xf32, #tpu.memory_space<vmem>>) attributes {dimension_semantics = [#tpu.dimension_semantics<parallel>], iteration_bounds = array<i64: 1>, scalar_prefetch = 0 : i64, scratch_operands = 0 : i64, tpu.core_type = #tpu.core_type<tc>, window_params = [{transform_indices = @transform_0, window_bounds = array<i64: 9>}, {transform_indices = @transform_1, window_bounds = array<i64: 3>}, {transform_indices = @transform_2, window_bounds = array<i64: 2, 16, 128>}, {transform_indices = @transform_3, window_bounds = array<i64: 3, 16, 128>}]} {
    %c0 = arith.constant 0 : index
    %c0_0 = arith.constant 0 : index
    %c0_1 = arith.constant 0 : index
    %0 = vector.load %arg3[%c0, %c0_0, %c0_1] : memref<2x16x128xf32, #tpu.memory_space<vmem>>, vector<1x16x128xf32>
    %1 = vector.shape_cast %0 : vector<1x16x128xf32> to vector<16x128xf32>
    %c1 = arith.constant 1 : index
    %c0_2 = arith.constant 0 : index
    %c0_3 = arith.constant 0 : index
    %2 = vector.load %arg3[%c1, %c0_2, %c0_3] : memref<2x16x128xf32, #tpu.memory_space<vmem>>, vector<1x16x128xf32>
    %3 = vector.shape_cast %2 : vector<1x16x128xf32> to vector<16x128xf32>
    %c0_4 = arith.constant 0 : index
    %4 = memref.load %arg1[%c0_4] : memref<9xf32, #tpu.memory_space<smem>>
    %c1_5 = arith.constant 1 : index
    %5 = memref.load %arg1[%c1_5] : memref<9xf32, #tpu.memory_space<smem>>
    %c3 = arith.constant 3 : index
    %6 = memref.load %arg1[%c3] : memref<9xf32, #tpu.memory_space<smem>>
    %c4 = arith.constant 4 : index
    %7 = memref.load %arg1[%c4] : memref<9xf32, #tpu.memory_space<smem>>
    %c6 = arith.constant 6 : index
    %8 = memref.load %arg1[%c6] : memref<9xf32, #tpu.memory_space<smem>>
    %c7 = arith.constant 7 : index
    %9 = memref.load %arg1[%c7] : memref<9xf32, #tpu.memory_space<smem>>
    %c0_6 = arith.constant 0 : index
    %10 = memref.load %arg2[%c0_6] : memref<3xf32, #tpu.memory_space<smem>>
    %c1_7 = arith.constant 1 : index
    %11 = memref.load %arg2[%c1_7] : memref<3xf32, #tpu.memory_space<smem>>
    %c2 = arith.constant 2 : index
    %12 = memref.load %arg2[%c2] : memref<3xf32, #tpu.memory_space<smem>>
    %13 = vector.broadcast %4 : f32 to vector<16x128xf32>
    %14 = arith.mulf %1, %13 : vector<16x128xf32>
    %15 = vector.broadcast %5 : f32 to vector<16x128xf32>
    %16 = arith.mulf %3, %15 : vector<16x128xf32>
    %17 = arith.addf %14, %16 : vector<16x128xf32>
    %18 = vector.broadcast %10 : f32 to vector<16x128xf32>
    %19 = arith.addf %17, %18 : vector<16x128xf32>
    %c0_8 = arith.constant 0 : index
    %c0_9 = arith.constant 0 : index
    %c0_10 = arith.constant 0 : index
    %20 = vector.load %arg4[%c0_8, %c0_9, %c0_10] : memref<3x16x128xf32, #tpu.memory_space<vmem>>, vector<1x16x128xf32>
    %21 = vector.shape_cast %20 : vector<1x16x128xf32> to vector<16x128xf32>
    %22 = vector.shape_cast %19 : vector<16x128xf32> to vector<1x16x128xf32>
    tpu.vector_store %arg4[%c0_8, %c0_9, %c0_10], %22 {strides = array<i32>} : memref<3x16x128xf32, #tpu.memory_space<vmem>>, vector<1x16x128xf32>,
    %23 = vector.broadcast %6 : f32 to vector<16x128xf32>
    %24 = arith.mulf %1, %23 : vector<16x128xf32>
    %25 = vector.broadcast %7 : f32 to vector<16x128xf32>
    %26 = arith.mulf %3, %25 : vector<16x128xf32>
    %27 = arith.addf %24, %26 : vector<16x128xf32>
    %28 = vector.broadcast %11 : f32 to vector<16x128xf32>
    %29 = arith.addf %27, %28 : vector<16x128xf32>
    %c1_11 = arith.constant 1 : index
    %c0_12 = arith.constant 0 : index
    %c0_13 = arith.constant 0 : index
    %30 = vector.load %arg4[%c1_11, %c0_12, %c0_13] : memref<3x16x128xf32, #tpu.memory_space<vmem>>, vector<1x16x128xf32>
    %31 = vector.shape_cast %30 : vector<1x16x128xf32> to vector<16x128xf32>
    %32 = vector.shape_cast %29 : vector<16x128xf32> to vector<1x16x128xf32>
    tpu.vector_store %arg4[%c1_11, %c0_12, %c0_13], %32 {strides = array<i32>} : memref<3x16x128xf32, #tpu.memory_space<vmem>>, vector<1x16x128xf32>,
    %33 = vector.broadcast %8 : f32 to vector<16x128xf32>
    %34 = arith.mulf %1, %33 : vector<16x128xf32>
    %35 = vector.broadcast %9 : f32 to vector<16x128xf32>
    %36 = arith.mulf %3, %35 : vector<16x128xf32>
    %37 = arith.addf %34, %36 : vector<16x128xf32>
    %38 = vector.broadcast %12 : f32 to vector<16x128xf32>
    %39 = arith.addf %37, %38 : vector<16x128xf32>
    %c2_14 = arith.constant 2 : index
    %c0_15 = arith.constant 0 : index
    %c0_16 = arith.constant 0 : index
    %40 = vector.load %arg4[%c2_14, %c0_15, %c0_16] : memref<3x16x128xf32, #tpu.memory_space<vmem>>, vector<1x16x128xf32>
    %41 = vector.shape_cast %40 : vector<1x16x128xf32> to vector<16x128xf32>
    %42 = vector.shape_cast %39 : vector<16x128xf32> to vector<1x16x128xf32>
    tpu.vector_store %arg4[%c2_14, %c0_15, %c0_16], %42 {strides = array<i32>} : memref<3x16x128xf32, #tpu.memory_space<vmem>>, vector<1x16x128xf32>,
    return
  }
  func.func @transform_0(%arg0: i32) -> i32 {
    %c0_i32 = arith.constant 0 : i32
    %c0_i32_0 = arith.constant 0 : i32
    return %c0_i32 : i32
  }
  func.func @transform_1(%arg0: i32) -> i32 {
    %c0_i32 = arith.constant 0 : i32
    %c0_i32_0 = arith.constant 0 : i32
    return %c0_i32 : i32
  }
  func.func @transform_2(%arg0: i32) -> (i32, i32, i32) {
    %c0_i32 = arith.constant 0 : i32
    %c0_i32_0 = arith.constant 0 : i32
    %c0_i32_1 = arith.constant 0 : i32
    return %c0_i32, %arg0, %c0_i32_0 : i32, i32, i32
  }
  func.func @transform_3(%arg0: i32) -> (i32, i32, i32) {
    %c0_i32 = arith.constant 0 : i32
    %c0_i32_0 = arith.constant 0 : i32
    %c0_i32_1 = arith.constant 0 : i32
    return %c0_i32, %arg0, %c0_i32_0 : i32, i32, i32
  }
}

</mosaic_0001>

<bundles_post_ra>
// kernel: tpu_custom_call.1
= control target key start
LH: loop header
LB: loop body
LE: loop exit
PB: predicated region body
PF: predicated region fallthrough
CT: control target
= control target key end

     0   :  { %8 = vsyncpa [#allocation5], 0  ;;  %s299_s0 = inlined_call_operand.hbm [shape: f32[9], index: 0, kind: input, shape index: {}]   ;;  %s300_s1 = inlined_call_operand.vmem [shape: f32[3], index: 1, kind: input, shape index: {}]   ;;  %s301_s2 = inlined_call_operand.hbm [shape: f32[2,16,128], index: 2, kind: input, shape index: {}]   ;;  %s302_s3 = inlined_call_operand.hbm [shape: f32[3,16,128], index: 3, kind: output, shape index: {}]  }
   0x1   :  { %9 = vsyncpa [#allocation6], 0 }
   0x2   :  { %10 = vsyncpa [#allocation3], 0 }
   0x3   :  { %11 = vsyncpa [#allocation4], 0  ;;  %s26_s14 = sshll.u32 %s300_s1, 4  ;;  %s139_s17 = scalar_lea.hbm %s299_s0, 16  ;;  %s27_s14 = int_to_ptr.vmem [resolvable:$true] %s26_s14 }
   0x4   :  { %p140_p0 = scmp.ne.s32.totalorder %s299_s0, %s139_s17  ;;  %p143_p1 = scmp.lt.u32.totalorder %s139_s17, %s299_s0 }
   0x6   :  { %p145_p2 = pnand %p143_p1, %p140_p0 }
   0x8   :  { %148 = shalt.err (!%p145_p2)
}
   0x9   :  { %s213_s22 = smov [#allocation2]   ;;  %s149_s1 = scalar_lea.vmem %s27_s14, 16 }
   0xa   :  { %19 = dma.hbm_to_smem %s299_s0, 16, %s213_s22, [#allocation5]  }
   0xb   :  { %p150_p3 = scmp.ne.s32.totalorder %s27_s14, %s149_s1  ;;  %p154_p4 = scmp.lt.s32.totalorder %s27_s14, %s27_s14 }
   0xc   :  { %p155_p5 = scmp.lt.s32.totalorder %s149_s1, %s149_s1 }
   0xe   :  { %p156_p6 = por %p155_p5, %p154_p4 }
  0x10   :  { %p157_p7 = pnand %p156_p6, %p150_p3 }
  0x12   :  { %160 = shalt.err (!%p157_p7)
}
  0x13   :  { %s214_s25 = smov [#allocation7]   ;;  %s215_s26 = smov [#allocation8]  }
  0x14   :  { %29 = dma.vmem_to_smem %s27_s14, 16, %s214_s25, [#allocation6]  }
  0x15   :  { %s35_s27 = sshll.u32 %s215_s26, 4  ;;  %s161_s30 = scalar_lea.hbm %s301_s2, 512  ;;  %s36_s27 = int_to_ptr.vmem [resolvable:$true] %s35_s27 }
  0x16   :  { %p162_p8 = scmp.ne.s32.totalorder %s301_s2, %s161_s30  ;;  %p165_p9 = scmp.lt.u32.totalorder %s161_s30, %s301_s2 }
  0x18   :  { %p167_p10 = pnand %p165_p9, %p162_p8 }
  0x1a   :  { %170 = shalt.err (!%p167_p10)
}
  0x1b   :  { %s171_s7 = scalar_lea.vmem %s36_s27, 512  ;;  %p176_p12 = scmp.lt.s32.totalorder %s36_s27, %s36_s27 }
  0x1c   :  { %p172_p11 = scmp.ne.s32.totalorder %s36_s27, %s171_s7  ;;  %p177_p13 = scmp.lt.s32.totalorder %s171_s7, %s171_s7 }
  0x1e   :  { %p178_p0 = por %p177_p13, %p176_p12 }
  0x20   :  { %p179_p1 = pnand %p178_p0, %p172_p11 }
  0x22   :  { %182 = shalt.err (!%p179_p1)
}
  0x23   :  { %s216_s8 = smov 128   ;;  %s217_s9 = smov 8  }
  0x24   :  { %41 = dma.hbm_to_vmem [thread:$0]  %s301_s2, 512, %s36_s27, [#allocation3], %s216_s8, %s216_s8, %s217_s9  }
  0x25   :  { %205 = dma.done.wait [#allocation5], 16  }
  0x26   :  { %206 = vsyncadd [#allocation5], 4294967280 }
  0x27   :  { %207 = dma.done.wait [#allocation6], 16  }
  0x28   :  { %208 = vsyncadd [#allocation6], 4294967280 }
  0x29   :  { %209 = dma.done.wait [#allocation3], 512  }
  0x2a   :  { %210 = vsyncadd [#allocation3], 4294966784 }
  0x2b   :  { %51 = sfence }
  0x2c   :  { %s57_s12 = sld [smem:[#allocation2]]  ;;  %s126_s13 = sld [smem:[#allocation2 + $0x1]]  ;;  %v52_v0 = vld [vmem:[#allocation8] sm:$0xff]  ;;  %v55_v1 = vld [vmem:[#allocation8 + $0x10] sm:$0xff]  ;;  %v53_v2 = vld [vmem:[#allocation8 + $0x8] sm:$0xff] }
  0x2d   :  { %s269_s14 = sld [smem:[#allocation7]]  ;;  %s127_s15 = sld [smem:[#allocation2 + $0x3]]  ;;  %v56_v3 = vld [vmem:[#allocation8 + $0x18] sm:$0xff] }
  0x2e   :  { %s128_s16 = sld [smem:[#allocation2 + $0x4]]  ;;  %s271_s17 = sld [smem:[#allocation7 + $0x1]] }
  0x2f   :  { %s273_s18 = sld [smem:[#allocation2 + $0x6]]  ;;  %s275_s2 = sld [smem:[#allocation2 + $0x7]] }
  0x30   :  { %s277_s19 = sld [smem:[#allocation7 + $0x2]]  ;;  %s218_s20 = smov [#allocation9]  }
  0x31   :  { %s112_s21 = sshll.u32 %s218_s20, 4  ;;  %s113_s21 = int_to_ptr.vmem [resolvable:$true] %s112_s21 }
  0x32   :  { %v66_v4 = vstv %s57_s12  ;;  %v69_v5 = vstv %s126_s13  ;;  %s183_s22 = scalar_lea.vmem %s113_s21, 768  ;;  %p188_p3 = scmp.lt.s32.totalorder %s113_s21, %s113_s21 }
  0x33   :  { %v67_v6 = vmul.f32 %v66_v4, %v52_v0  ;;  %v70_v7 = vmul.f32 %v69_v5, %v55_v1  ;;  %v74_v8 = vstv %s269_s14  ;;  %v68_v9 = vmul.f32 %v66_v4, %v53_v2  ;;  %p184_p2 = scmp.ne.s32.totalorder %s113_s21, %s183_s22  ;;  %p189_p4 = scmp.lt.s32.totalorder %s183_s22, %s183_s22 }
  0x34   :  { %v71_v10 = vmul.f32 %v69_v5, %v56_v3  ;;  %v79_v11 = vstv %s127_s15  ;;  %v82_v12 = vstv %s128_s16  ;;  %v87_v13 = vstv %s271_s17 }
  0x35   :  { %v72_v14 = vadd.f32 %v70_v7, %v67_v6  ;;  %v80_v15 = vmul.f32 %v79_v11, %v52_v0  ;;  %v83_v16 = vmul.f32 %v82_v12, %v55_v1  ;;  %v81_v17 = vmul.f32 %v79_v11, %v53_v2  ;;  %p190_p5 = por %p189_p4, %p188_p3 }
  0x36   :  { %v73_v18 = vadd.f32 %v71_v10, %v68_v9  ;;  %v84_v19 = vmul.f32 %v82_v12, %v56_v3  ;;  %v93_v20 = vstv %s273_s18  ;;  %v96_v21 = vstv %s275_s2 }
  0x37   :  { %v75_v22 = vadd.f32 %v74_v8, %v72_v14  ;;  %v85_v23 = vadd.f32 %v83_v16, %v80_v15  ;;  %v94_v24 = vmul.f32 %v93_v20, %v52_v0  ;;  %v97_v25 = vmul.f32 %v96_v21, %v55_v1  ;;  %p191_p6 = pnand %p190_p5, %p184_p2 }
  0x38   :  { %v76_v26 = vadd.f32 %v74_v8, %v73_v18  ;;  %v86_v27 = vadd.f32 %v84_v19, %v81_v17  ;;  %v101_v28 = vstv %s277_s19  ;;  %v95_v29 = vmul.f32 %v93_v20, %v53_v2 }
  0x39   :  { %77 = vst [vmem:[#allocation9] sm:$0xff] %v75_v22  ;;  %v88_v30 = vadd.f32 %v87_v13, %v85_v23  ;;  %v99_v31 = vadd.f32 %v97_v25, %v94_v24  ;;  %v98_v32 = vmul.f32 %v96_v21, %v56_v3 }
  0x3a   :  { %78 = vst [vmem:[#allocation9 + $0x8] sm:$0xff] %v76_v26  ;;  %v89_v33 = vadd.f32 %v87_v13, %v86_v27 }
  0x3b   :  { %91 = vst [vmem:[#allocation9 + $0x10] sm:$0xff] %v88_v30  ;;  %v102_v34 = vadd.f32 %v101_v28, %v99_v31  ;;  %v100_v35 = vadd.f32 %v98_v32, %v95_v29 }
  0x3c   :  { %92 = vst [vmem:[#allocation9 + $0x18] sm:$0xff] %v89_v33 }
  0x3d   :  { %105 = vst [vmem:[#allocation9 + $0x20] sm:$0xff] %v102_v34  ;;  %v103_v36 = vadd.f32 %v101_v28, %v100_v35 }
  0x3f   :  { %106 = vst [vmem:[#allocation9 + $0x28] sm:$0xff] %v103_v36 }
  0x40   :  { %194 = shalt.err (!%p191_p6)
}
  0x41   :  { %s195_s1 = scalar_lea.hbm %s302_s3, 768 }
  0x42   :  { %p196_p7 = scmp.ne.s32.totalorder %s302_s3, %s195_s1  ;;  %p199_p8 = scmp.lt.u32.totalorder %s195_s1, %s302_s3 }
  0x44   :  { %p201_p9 = pnand %p199_p8, %p196_p7 }
  0x46   :  { %204 = shalt.err (!%p201_p9)
}
  0x47   :  { %118 = dma.vmem_to_hbm [thread:$0]  %s113_s21, 768, %s302_s3, [#allocation4], %s216_s8, %s216_s8, %s217_s9  }
  0x48   :  { %211 = dma.done.wait [#allocation4], 768  }
  0x49   :  { %212 = vsyncadd [#allocation4], 4294966528 }
  0x4a   :  { %122 = vsyncpa [#allocation3], 1 }
  0x4b   :  { %123 = vsyncpa [#allocation4], 1 }
  0x4c   :  { %124 = vsyncpa [#allocation5], 1 }
  0x4d   :  { %125 = vsyncpa [#allocation6], 1 }

</bundles_post_ra>
